<compile_context>
chip_gen: v7x
topology: tpu7x:2x2x1
jax: 0.10.0
libtpu: 0.0.40
codegen_flags: <defaults>
</compile_context>

<pallas_src>
import functools

import jax
import jax.numpy as jnp
from jax.experimental import pallas as pl
from jax.experimental.pallas import tpu as pltpu

_LANES = 128        # vreg lane width: feature/output dims are padded to this
_TB_CAP = 256       # max batch rows per grid step (bounds vreg/VMEM pressure)
_SPLIT_BATCH = 256  # single grid step up to this many rows (launch-bound regime)


def _round_up(x, m):
    return ((x + m - 1) // m) * m


def _batch_tile(batch):
    """Batch rows per grid step.

    <=256 rows: one grid step. A multi-step grid is a *serial* loop on
    v5e/v6e (only adds ~0.35 us/step for ~10 ns of MXU work), and v7x
    megacore sharding does not pay off at this size either.
    >256 rows: 256-row tiles on a 'parallel' axis; v7x's two TensorCores each
    take half the tiles, and the tile stays small enough that the fused
    kernel's intermediates fit comfortably on every generation.
    """
    return batch if batch <= _SPLIT_BATCH else _TB_CAP


# ---------------------------------------------------------------------------
# Kernels
# ---------------------------------------------------------------------------
def _linear_kernel(x_ref, wt_ref, o_ref):
    # x : (TB, K)   bf16      wt: (K, Npad) bf16 (pre-transposed, lane-padded)
    # o : (TB, Npad) f32      bf16 MXU inputs, f32 accumulation.
    o_ref[...] = jnp.dot(x_ref[...], wt_ref[...],
                         preferred_element_type=jnp.float32)


def _fused_two_layer_kernel(x_ref, w1t_ref, w2t_ref, o_ref, feat_ref):
    # feat = clip(x @ W1^T, 0, 0.9); out = feat @ W2^T — one launch, both
    # weights resident in VMEM, the intermediate staged in a bf16 VMEM
    # scratch (bounded vreg pressure at TB=256), only the final slab stored.
    feat = jnp.dot(x_ref[...], w1t_ref[...], preferred_element_type=jnp.float32)
    feat_ref[...] = jnp.clip(feat, 0.0, 0.9).astype(jnp.bfloat16)
    o_ref[...] = jnp.dot(feat_ref[...], w2t_ref[...],
                         preferred_element_type=jnp.float32)


# ---------------------------------------------------------------------------
# Wrappers
# ---------------------------------------------------------------------------
def _as_2d_bf16(spikes):
    x = spikes
    squeeze = False
    if x.ndim == 1:                       # single frame (torch squeeze(0) path)
        x = x[None, :]
        squeeze = True
    if x.dtype != jnp.bfloat16:           # no-op when spikes produced as bf16
        x = x.astype(jnp.bfloat16)
    return x, squeeze


@functools.partial(jax.jit, static_argnames=("n_out", "trim"))
def linear_forward(spikes, w_t, *, n_out, trim=True):
    """Pallas nn.Linear(bias=False): spikes @ W^T, W stored pre-transposed (K, Npad) bf16."""
    x, squeeze = _as_2d_bf16(spikes)
    kw, npad = w_t.shape
    if x.shape[-1] < kw:
        # Slow fallback (extra XLA pad). Chained layer calls should pass the
        # lane-padded activations (trim=False) so this never triggers.
        x = jnp.pad(x, ((0, 0), (0, kw - x.shape[-1])))
    assert x.shape[-1] == kw, (x.shape, w_t.shape)
    b = x.shape[0]
    tb = _batch_tile(b)
    out = pl.pallas_call(
        _linear_kernel,
        out_shape=jax.ShapeDtypeStruct((b, npad), jnp.float32),
        grid=(pl.cdiv(b, tb),),
        in_specs=[
            pl.BlockSpec((tb, kw), lambda i: (i, 0)),
            # Constant index_map -> weight resident across the grid; a single
            # buffer suffices (no second VMEM buffer / DMA bookkeeping).
            pl.BlockSpec((kw, npad), lambda i: (0, 0),
                         pipeline_mode=pl.Buffered(1)),
        ],
        out_specs=pl.BlockSpec((tb, npad), lambda i: (i, 0)),
        compiler_params=pltpu.CompilerParams(dimension_semantics=("parallel",)),
    )(x, w_t)
    if trim:
        out = out[:, :n_out]   # pass trim=False downstream to skip this copy
    if squeeze:
        out = out[0]
    return out


@functools.partial(jax.jit, static_argnames=("n_out", "trim"))
def fused_two_layer_forward(spikes, w1_t, w2_t, *, n_out, trim=True):
    """feat = clip(spikes @ W1^T, 0, 0.9); out = feat @ W2^T — one pallas_call."""
    x, squeeze = _as_2d_bf16(spikes)
    k, f = w1_t.shape
    f2, npad = w2_t.shape
    assert x.shape[-1] == k and f == f2, (x.shape, w1_t.shape, w2_t.shape)
    b = x.shape[0]
    tb = _batch_tile(b)
    out = pl.pallas_call(
        _fused_two_layer_kernel,
        out_shape=jax.ShapeDtypeStruct((b, npad), jnp.float32),
        grid=(pl.cdiv(b, tb),),
        in_specs=[
            pl.BlockSpec((tb, k), lambda i: (i, 0)),
            pl.BlockSpec((k, f), lambda i: (0, 0), pipeline_mode=pl.Buffered(1)),
            pl.BlockSpec((f, npad), lambda i: (0, 0), pipeline_mode=pl.Buffered(1)),
        ],
        out_specs=pl.BlockSpec((tb, npad), lambda i: (i, 0)),
        scratch_shapes=[pltpu.VMEM((tb, f), jnp.bfloat16)],
        compiler_params=pltpu.CompilerParams(dimension_semantics=("parallel",)),
    )(x, w1_t, w2_t)
    if trim:
        out = out[:, :n_out]
    if squeeze:
        out = out[0]
    return out


class _Layer:
    """Minimal stand-in for bn.SNNLayer: holds the (pre-transposed) Linear weight."""

    def __init__(self, w_t, n_out):
        self.w_t = w_t          # (in_features, out_features_padded) bf16
        self.n_out = n_out      # true out_features


class LENSTrainerPallas:
    """JAX/Pallas mirror of LENS_Trainer's trainable layers + forward."""

    def __init__(self, dims, feature_multiplier, reference_places, key):
        self.input = int(dims * dims)
        self.feature = int(self.input * feature_multiplier)
        self.output = int(reference_places)

        k1, k2 = jax.random.split(key)
        # PyTorch layout (out_features, in_features), as SNNLayer.w would hold.
        w1 = jax.random.normal(k1, (self.feature, self.input), jnp.float32) * 0.1
        w2 = jax.random.normal(k2, (self.output, self.feature), jnp.float32) * 0.1

        # One-time layout conversion (instead of per-call weight.T):
        #  transpose -> (in, out), pad out_features to a 128-lane multiple, bf16.
        self.feature_pad = _round_up(self.feature, _LANES)
        self.output_pad = _round_up(self.output, _LANES)
        w1_t = jnp.zeros((self.input, self.feature_pad), jnp.bfloat16)
        w1_t = w1_t.at[:, : self.feature].set(w1.T.astype(jnp.bfloat16))
        w2_t = jnp.zeros((self.feature_pad, self.output_pad), jnp.bfloat16)
        w2_t = w2_t.at[: self.feature, : self.output].set(w2.T.astype(jnp.bfloat16))

        self.feature_layer = _Layer(w1_t, self.feature)
        self.output_layer = _Layer(w2_t, self.output)

    def forward(self, spikes, layer, trim=True):
        """Mirror of LENS_Trainer.forward: spikes -> layer.w(spikes)."""
        return linear_forward(spikes, layer.w_t, n_out=layer.n_out, trim=trim)

    def forward_fused(self, spikes, trim=True):
        """Output-layer training path (prev_layers=['feature_layer']) fused:
        feature_layer -> bn.clamp_spikes -> output_layer in one kernel."""
        return fused_two_layer_forward(
            spikes, self.feature_layer.w_t, self.output_layer.w_t,
            n_out=self.output, trim=trim)

    # TODO(synk): STDP/IP weight updates, learning-rate annealing and the
    # data-loader/logging in train_layer are host-side training glue, not the
    # module forward pass, and are not implemented here.


if __name__ == "__main__":
    key = jax.random.PRNGKey(0)
    k_model, k_data, k_data2 = jax.random.split(key, 3)

    # Shapes consistent with the module:
    #   dims=8 -> input=64; feature_multiplier=2 -> feature=128;
    #   reference_places=32 -> output=32 (padded to 128 lanes in-kernel).
    dims, feature_multiplier, reference_places = 8, 2, 32
    model = LENSTrainerPallas(dims, feature_multiplier, reference_places, k_model)

    # Spikes produced directly as bf16 upstream (no extra cast op on the hot path).
    # Real training should batch >=1024 frames per call to amortize launch cost.
    batch = 128   # <= 256 -> single grid step (launch-bound regime)
    spikes = jax.random.uniform(k_data, (batch, model.input)).astype(jnp.bfloat16)

    # Fused train path: feature_layer -> clamp -> output_layer, one pallas_call.
    out = jax.block_until_ready(model.forward_fused(spikes))

    # Unfused module-forward path; chain via the lane-padded output (trim=False)
    # so no slice copy and no K-pad fallback between the two layers.
    feat_p = model.forward(spikes, model.feature_layer, trim=False)
    out_unfused = jax.block_until_ready(
        model.forward(jnp.clip(feat_p, 0.0, 0.9), model.output_layer))

    # Plain-JAX references with identical bf16-weight / f32-accumulate math.
    w1 = model.feature_layer.w_t.astype(jnp.float32)[:, : model.feature]
    w2 = model.output_layer.w_t.astype(jnp.float32)[: model.feature, : model.output]
    xf = spikes.astype(jnp.float32)
    ref_feat = xf @ w1
    ref_out = jnp.clip(ref_feat, 0.0, 0.9).astype(jnp.bfloat16).astype(jnp.float32) @ w2

    assert out.shape == (batch, model.output)
    assert jnp.allclose(feat_p[:, : model.feature], ref_feat, atol=2e-3, rtol=2e-3)
    assert jnp.allclose(out_unfused, ref_out, atol=2e-3, rtol=2e-3)
    assert jnp.allclose(out, ref_out, atol=2e-3, rtol=2e-3)

    # Tiled path: batch > 256 -> 256-row 'parallel' tiles (v7x megacore split),
    # non-divisible batch exercises the cdiv partial last block (no jnp.pad).
    batch2 = 320
    spikes2 = jax.random.uniform(k_data2, (batch2, model.input)).astype(jnp.bfloat16)
    out2 = jax.block_until_ready(model.forward_fused(spikes2))
    ref_out2 = (jnp.clip(spikes2.astype(jnp.float32) @ w1, 0.0, 0.9)
                .astype(jnp.bfloat16).astype(jnp.float32) @ w2)
    assert out2.shape == (batch2, model.output)
    assert jnp.allclose(out2, ref_out2, atol=2e-3, rtol=2e-3)

    print("KERNEL_OK")
</pallas_src>

<mosaic_0001>
module attributes {stable_mosaic.version = 11 : i64} {
  func.func @_fused_two_layer_kernel(%arg0: i32, %arg1: memref<128x64xbf16, #tpu.memory_space<vmem>>, %arg2: memref<64x128xbf16, #tpu.memory_space<vmem>>, %arg3: memref<128x128xbf16, #tpu.memory_space<vmem>>, %arg4: memref<128x128xf32, #tpu.memory_space<vmem>>, %arg5: memref<128x128xbf16, #tpu.memory_space<vmem>>) attributes {dimension_semantics = [#tpu.dimension_semantics<parallel>], iteration_bounds = array<i64: 1>, scalar_prefetch = 0 : i64, scratch_operands = 1 : i64, tpu.core_type = #tpu.core_type<tc>, window_params = [{transform_indices = @transform_0, window_bounds = array<i64: 128, 64>}, {pipeline_mode = #tpu.pipeline_mode<synchronous>, transform_indices = @transform_1, window_bounds = array<i64: 64, 128>}, {pipeline_mode = #tpu.pipeline_mode<synchronous>, transform_indices = @transform_2, window_bounds = array<i64: 128, 128>}, {transform_indices = @transform_3, window_bounds = array<i64: 128, 128>}]} {
    %c0 = arith.constant 0 : index
    %c0_0 = arith.constant 0 : index
    %0 = vector.load %arg1[%c0, %c0_0] : memref<128x64xbf16, #tpu.memory_space<vmem>>, vector<128x64xbf16>
    %c0_1 = arith.constant 0 : index
    %c0_2 = arith.constant 0 : index
    %1 = vector.load %arg2[%c0_1, %c0_2] : memref<64x128xbf16, #tpu.memory_space<vmem>>, vector<64x128xbf16>
    %cst = arith.constant dense<0.000000e+00> : vector<128x128xf32>
    %2 = tpu.matmul %0, %1, %cst {dimension_numbers = #tpu.dot_dimension_numbers<[1], [0], [0], [1], [0, 0, 1, 1], [], []>} : vector<128x64xbf16>, vector<64x128xbf16>, vector<128x128xf32> -> vector<128x128xf32>
    %cst_3 = arith.constant 0.000000e+00 : f32
    %cst_4 = arith.constant 0.899999976 : f32
    %3 = vector.broadcast %cst_3 : f32 to vector<128x128xf32>
    %4 = arith.maximumf %3, %2 : vector<128x128xf32>
    %5 = vector.broadcast %cst_4 : f32 to vector<128x128xf32>
    %6 = arith.minimumf %5, %4 : vector<128x128xf32>
    %7 = arith.truncf %6 : vector<128x128xf32> to vector<128x128xbf16>
    %c0_5 = arith.constant 0 : index
    %c0_6 = arith.constant 0 : index
    %8 = vector.load %arg5[%c0_5, %c0_6] : memref<128x128xbf16, #tpu.memory_space<vmem>>, vector<128x128xbf16>
    tpu.vector_store %arg5[%c0_5, %c0_6], %7 {strides = array<i32>} : memref<128x128xbf16, #tpu.memory_space<vmem>>, vector<128x128xbf16>,
    %c0_7 = arith.constant 0 : index
    %c0_8 = arith.constant 0 : index
    %9 = vector.load %arg5[%c0_7, %c0_8] : memref<128x128xbf16, #tpu.memory_space<vmem>>, vector<128x128xbf16>
    %c0_9 = arith.constant 0 : index
    %c0_10 = arith.constant 0 : index
    %10 = vector.load %arg3[%c0_9, %c0_10] : memref<128x128xbf16, #tpu.memory_space<vmem>>, vector<128x128xbf16>
    %cst_11 = arith.constant dense<0.000000e+00> : vector<128x128xf32>
    %11 = tpu.matmul %9, %10, %cst_11 {dimension_numbers = #tpu.dot_dimension_numbers<[1], [0], [0], [1], [0, 0, 1, 1], [], []>} : vector<128x128xbf16>, vector<128x128xbf16>, vector<128x128xf32> -> vector<128x128xf32>
    %c0_12 = arith.constant 0 : index
    %c0_13 = arith.constant 0 : index
    %12 = vector.load %arg4[%c0_12, %c0_13] : memref<128x128xf32, #tpu.memory_space<vmem>>, vector<128x128xf32>
    tpu.vector_store %arg4[%c0_12, %c0_13], %11 {strides = array<i32>} : memref<128x128xf32, #tpu.memory_space<vmem>>, vector<128x128xf32>,
    return
  }
  func.func @transform_0(%arg0: i32) -> (i32, i32) {
    %c0_i32 = arith.constant 0 : i32
    %c0_i32_0 = arith.constant 0 : i32
    return %arg0, %c0_i32 : i32, i32
  }
  func.func @transform_1(%arg0: i32) -> (i32, i32) {
    %c0_i32 = arith.constant 0 : i32
    %c0_i32_0 = arith.constant 0 : i32
    %c0_i32_1 = arith.constant 0 : i32
    return %c0_i32, %c0_i32_0 : i32, i32
  }
  func.func @transform_2(%arg0: i32) -> (i32, i32) {
    %c0_i32 = arith.constant 0 : i32
    %c0_i32_0 = arith.constant 0 : i32
    %c0_i32_1 = arith.constant 0 : i32
    return %c0_i32, %c0_i32_0 : i32, i32
  }
  func.func @transform_3(%arg0: i32) -> (i32, i32) {
    %c0_i32 = arith.constant 0 : i32
    %c0_i32_0 = arith.constant 0 : i32
    return %arg0, %c0_i32 : i32, i32
  }
}

</mosaic_0001>

<bundles_post_ra>
// kernel: fused_two_layer_forward.1
= control target key start
LH: loop header
LB: loop body
LE: loop exit
PB: predicated region body
PF: predicated region fallthrough
CT: control target
= control target key end

     0   :  { %vm103_vm0 = vcmask 523264   ;;  %s746_s1 = inlined_call_operand.vmem [shape: bf16[64,128], index: 1, kind: input, shape index: {}]   ;;  %s747_s0 = inlined_call_operand.vmem [shape: bf16[128,64], index: 0, kind: input, shape index: {}]   ;;  %s748_s2 = inlined_call_operand.vmem [shape: bf16[128,128], index: 2, kind: input, shape index: {}]   ;;  %s749_s3 = inlined_call_operand.vmem [shape: f32[128,128], index: 3, kind: output, shape index: {}]  }
   0x1   :  { %v590_v0 = vld [vmem:[%s746_s1] sm:$0xff]   ;;  %v591_v1 = vld [vmem:[%s746_s1 + $0x8] sm:$0xff]   ;;  %v592_v2 = vld [vmem:[%s746_s1 + $0x10] sm:$0xff]  }
   0x2   :  { %518 = vmatprep.subr.bf16.mxu0 %v590_v0  ;;  %v594_v3 = vld [vmem:[%s747_s0] sm:$0xff]   ;;  %v593_v4 = vld [vmem:[%s746_s1 + $0x18] sm:$0xff]   ;;  %v595_v6 = vld [vmem:[%s747_s0 + $0x8] sm:$0xff]  }
   0x3   :  { %519 = vmatpush3.bf16.msra.mxu0 %v590_v0  ;;  %526 = vmatprep.mubr.msk.bf16.mxu0 %vm103_vm0, %v594_v3  ;;  %v602_v5 = vld [vmem:[%s748_s2] sm:$0xff]   ;;  %v603_v7 = vld [vmem:[%s748_s2 + $0x8] sm:$0xff]   ;;  %v596_v8 = vld [vmem:[%s747_s0 + $0x10] sm:$0xff]  }
   0x4   :  { %520 = vmatprep.subr.bf16.mxu0 %v591_v1  ;;  %574 = vmatprep.subr.bf16.mxu1 %v602_v5  ;;  %v604_v9 = vld [vmem:[%s748_s2 + $0x10] sm:$0xff]   ;;  %v597_v10 = vld [vmem:[%s747_s0 + $0x18] sm:$0xff]   ;;  %v598_v11 = vld [vmem:[%s747_s0 + $0x20] sm:$0xff]  }
   0x5   :  { %582 = vmatpush3.bf16.msra.mxu1 %v602_v5  ;;  %v605_v12 = vld [vmem:[%s748_s2 + $0x18] sm:$0xff]   ;;  %v606_v13 = vld [vmem:[%s748_s2 + $0x20] sm:$0xff]   ;;  %v599_v14 = vld [vmem:[%s747_s0 + $0x28] sm:$0xff]  }
   0x6   :  { %575 = vmatprep.subr.bf16.mxu1 %v603_v7  ;;  %v600_v15 = vld [vmem:[%s747_s0 + $0x30] sm:$0xff]   ;;  %v607_v16 = vld [vmem:[%s748_s2 + $0x28] sm:$0xff]   ;;  %v601_v17 = vld [vmem:[%s747_s0 + $0x38] sm:$0xff]  }
   0x7   :  { %521 = vmatpush3.bf16.msra.mxu0 %v591_v1  ;;  %v608_v18 = vld [vmem:[%s748_s2 + $0x30] sm:$0xff]   ;;  %v609_v19 = vld [vmem:[%s748_s2 + $0x38] sm:$0xff]  }
   0x8   :  { %522 = vmatprep.subr.bf16.mxu0 %v592_v2 }
   0x9   :  { %583 = vmatpush3.bf16.msra.mxu1 %v603_v7 }
   0xa   :  { %576 = vmatprep.subr.bf16.mxu1 %v604_v9 }
   0xb   :  { %523 = vmatpush3.bf16.msra.mxu0 %v592_v2 }
   0xc   :  { %524 = vmatprep.subr.bf16.mxu0 %v593_v4 }
   0xd   :  { %584 = vmatpush3.bf16.msra.mxu1 %v604_v9 }
   0xe   :  { %577 = vmatprep.subr.bf16.mxu1 %v605_v12 }
   0xf   :  { %525 = vmatpush3.bf16.msra.mxu0 %v593_v4 }
  0x10   :  { %542 = vmatprep.subr.bf16.mxu0 %v602_v5 }
  0x11   :  { %585 = vmatpush3.bf16.msra.mxu1 %v605_v12 }
  0x12   :  { %527 = vmatmul.mubr.msk.bf16.vlgmr.msra.gmra.mrb[0].mxu0 %vm103_vm0, %v595_v6  ;;  %578 = vmatprep.subr.bf16.mxu1 %v606_v13 }
  0x13   :  { %530 = vmatprep.mubr.msk.bf16.mxu0 %vm103_vm0, %v596_v8  ;;  %543 = vmatpush3.bf16.msra.mxu0 %v602_v5 }
  0x14   :  { %544 = vmatprep.subr.bf16.mxu0 %v603_v7 }
  0x15   :  { %586 = vmatpush3.bf16.msra.mxu1 %v606_v13 }
  0x16   :  { %579 = vmatprep.subr.bf16.mxu1 %v607_v16 }
  0x17   :  { %545 = vmatpush3.bf16.msra.mxu0 %v603_v7 }
  0x18   :  { %546 = vmatprep.subr.bf16.mxu0 %v604_v9 }
  0x19   :  { %587 = vmatpush3.bf16.msra.mxu1 %v607_v16 }
  0x1a   :  { %531 = vmatmul.mubr.msk.bf16.gmra.mrb[4].mxu0 %vm103_vm0, %v597_v10  ;;  %580 = vmatprep.subr.bf16.mxu1 %v608_v18 }
  0x1b   :  { %534 = vmatprep.mubr.msk.bf16.mxu0 %vm103_vm0, %v598_v11  ;;  %547 = vmatpush3.bf16.msra.mxu0 %v604_v9 }
  0x1c   :  { %548 = vmatprep.subr.bf16.mxu0 %v605_v12 }
  0x1d   :  { %588 = vmatpush3.bf16.msra.mxu1 %v608_v18 }
  0x1e   :  { %581 = vmatprep.subr.bf16.mxu1 %v609_v19 }
  0x1f   :  { %549 = vmatpush3.bf16.msra.mxu0 %v605_v12 }
  0x20   :  { %550 = vmatprep.subr.bf16.mxu0 %v606_v13 }
  0x21   :  { %589 = vmatpush3.bf16.msra.mxu1 %v609_v19 }
  0x22   :  { %535 = vmatmul.mubr.msk.bf16.gmra.mrb[8].mxu0 %vm103_vm0, %v599_v14 }
  0x23   :  { %538 = vmatprep.mubr.msk.bf16.mxu0 %vm103_vm0, %v600_v15  ;;  %551 = vmatpush3.bf16.msra.mxu0 %v606_v13 }
  0x24   :  { %552 = vmatprep.subr.bf16.mxu0 %v607_v16 }
  0x27   :  { %553 = vmatpush3.bf16.msra.mxu0 %v607_v16 }
  0x28   :  { %554 = vmatprep.subr.bf16.mxu0 %v608_v18 }
  0x2a   :  { %539 = vmatmul.mubr.msk.bf16.gmra.mrb[12].mxu0 %vm103_vm0, %v601_v17 }
  0x2b   :  { %555 = vmatpush3.bf16.msra.mxu0 %v608_v18 }
  0x2c   :  { %556 = vmatprep.subr.bf16.mxu0 %v609_v19 }
  0x2f   :  { %557 = vmatpush3.bf16.msra.mxu0 %v609_v19 }
  0xe5   :  { %v528_v20 = vpop.f32.mrb[0].mxu0 }
  0xe6   :  { %v227_v21 = vmax.f32 %v528_v20, 0.0  ;;  %v162_v22 = vpop.f32.mrb[1].mxu0 }
  0xe7   :  { %v225_v23 = vmax.f32 %v162_v22, 0.0  ;;  %v529_v24 = vpop.f32.mrb[2].mxu0 }
  0xe8   :  { %v228_v25 = vmax.f32 %v529_v24, 0.0  ;;  %v165_v26 = vpop.f32.mrb[3].mxu0  ;;  %v243_v28 = vmin.f32 %v227_v21, 0.9 }
  0xe9   :  { %v226_v27 = vmax.f32 %v165_v26, 0.0  ;;  %v241_v30 = vmin.f32 %v225_v23, 0.9 }
  0xea   :  { %v244_v29 = vmin.f32 %v228_v25, 0.9 }
  0xeb   :  { %v242_v31 = vmin.f32 %v226_v27, 0.9 }
  0xec   :  { %v258_v32 = vpack.c.bf16 %v244_v29, %v243_v28 }
  0xed   :  { %v257_v33 = vpack.c.bf16 %v242_v31, %v241_v30  ;;  %v532_v34 = vpop.f32.mrb[4].mxu0 }
  0xee   :  { %v231_v35 = vmax.f32 %v532_v34, 0.0  ;;  %v178_v36 = vpop.f32.mrb[5].mxu0 }
  0xef   :  { %v229_v37 = vmax.f32 %v178_v36, 0.0  ;;  %v533_v38 = vpop.f32.mrb[6].mxu0  ;;  %558 = vmatprep.mubr.bf16.mxu0 %v257_v33 }
  0xf0   :  { %v232_v39 = vmax.f32 %v533_v38, 0.0  ;;  %v181_v40 = vpop.f32.mrb[7].mxu0  ;;  %559 = vmatmul.mubr.bf16.vlgmr.msra.gmra.mrb[16].mxu0 %v258_v32  ;;  %v247_v42 = vmin.f32 %v231_v35, 0.9 }
  0xf1   :  { %v230_v41 = vmax.f32 %v181_v40, 0.0  ;;  %v245_v44 = vmin.f32 %v229_v37, 0.9 }
  0xf2   :  { %v248_v43 = vmin.f32 %v232_v39, 0.9 }
  0xf3   :  { %v246_v45 = vmin.f32 %v230_v41, 0.9 }
  0xf4   :  { %v260_v46 = vpack.c.bf16 %v248_v43, %v247_v42 }
  0xf5   :  { %v536_v47 = vpop.f32.mrb[8].mxu0  ;;  %v259_v48 = vpack.c.bf16 %v246_v45, %v245_v44 }
  0xf6   :  { %v235_v49 = vmax.f32 %v536_v47, 0.0  ;;  %v194_v50 = vpop.f32.mrb[9].mxu0 }
  0xf7   :  { %v233_v51 = vmax.f32 %v194_v50, 0.0  ;;  %v537_v52 = vpop.f32.mrb[10].mxu0  ;;  %562 = vmatprep.mubr.bf16.mxu1 %v259_v48 }
  0xf8   :  { %v236_v53 = vmax.f32 %v537_v52, 0.0  ;;  %v197_v54 = vpop.f32.mrb[11].mxu0  ;;  %563 = vmatmul.mubr.bf16.vlgmr.msra.gmra.mrb[0].mxu1 %v260_v46  ;;  %v251_v56 = vmin.f32 %v235_v49, 0.9 }
  0xf9   :  { %v234_v55 = vmax.f32 %v197_v54, 0.0  ;;  %v249_v58 = vmin.f32 %v233_v51, 0.9 }
  0xfa   :  { %v252_v57 = vmin.f32 %v236_v53, 0.9 }
  0xfb   :  { %v250_v59 = vmin.f32 %v234_v55, 0.9 }
  0xfc   :  { %v262_v60 = vpack.c.bf16 %v252_v57, %v251_v56 }
  0xfd   :  { %v261_v61 = vpack.c.bf16 %v250_v59, %v249_v58  ;;  %v540_v62 = vpop.f32.mrb[12].mxu0 }
  0xfe   :  { %v239_v63 = vmax.f32 %v540_v62, 0.0  ;;  %v210_v0 = vpop.f32.mrb[13].mxu0 }
  0xff   :  { %v237_v1 = vmax.f32 %v210_v0, 0.0  ;;  %v541_v2 = vpop.f32.mrb[14].mxu0  ;;  %566 = vmatprep.mubr.bf16.mxu1 %v261_v61 }
 0x100   :  { %v240_v3 = vmax.f32 %v541_v2, 0.0  ;;  %v213_v4 = vpop.f32.mrb[15].mxu0  ;;  %567 = vmatmul.mubr.bf16.gmra.mrb[4].mxu1 %v262_v60  ;;  %v255_v6 = vmin.f32 %v239_v63, 0.9 }
 0x101   :  { %v238_v5 = vmax.f32 %v213_v4, 0.0  ;;  %v253_v8 = vmin.f32 %v237_v1, 0.9 }
 0x102   :  { %v256_v7 = vmin.f32 %v240_v3, 0.9 }
 0x103   :  { %v254_v9 = vmin.f32 %v238_v5, 0.9 }
 0x104   :  { %v264_v10 = vpack.c.bf16 %v256_v7, %v255_v6 }
 0x105   :  { %v263_v11 = vpack.c.bf16 %v254_v9, %v253_v8 }
 0x107   :  { %570 = vmatprep.mubr.bf16.mxu1 %v263_v11 }
 0x108   :  { %571 = vmatmul.mubr.bf16.gmra.mrb[8].mxu1 %v264_v10 }
 0x1c3   :  { %v560_v12 = vpop.f32.mrb[16].mxu0 }
 0x1c4   :  { %444 = vst [vmem:[%s749_s3 + $0x10] sm:$0xff] %v560_v12  ;;  %v379_v13 = vpop.f32.mrb[17].mxu0 }
 0x1c5   :  { %442 = vst [vmem:[%s749_s3] sm:$0xff] %v379_v13  ;;  %v561_v14 = vpop.f32.mrb[18].mxu0 }
 0x1c6   :  { %445 = vst [vmem:[%s749_s3 + $0x18] sm:$0xff] %v561_v14  ;;  %v382_v15 = vpop.f32.mrb[19].mxu0 }
 0x1c7   :  { %443 = vst [vmem:[%s749_s3 + $0x8] sm:$0xff] %v382_v15 }
 0x1cb   :  { %v564_v16 = vpop.f32.mrb[0].mxu1 }
 0x1cc   :  { %448 = vst [vmem:[%s749_s3 + $0x30] sm:$0xff] %v564_v16  ;;  %v395_v17 = vpop.f32.mrb[1].mxu1 }
 0x1cd   :  { %446 = vst [vmem:[%s749_s3 + $0x20] sm:$0xff] %v395_v17  ;;  %v565_v18 = vpop.f32.mrb[2].mxu1 }
 0x1ce   :  { %449 = vst [vmem:[%s749_s3 + $0x38] sm:$0xff] %v565_v18  ;;  %v398_v19 = vpop.f32.mrb[3].mxu1 }
 0x1cf   :  { %447 = vst [vmem:[%s749_s3 + $0x28] sm:$0xff] %v398_v19 }
 0x1d3   :  { %v568_v20 = vpop.f32.mrb[4].mxu1 }
 0x1d4   :  { %452 = vst [vmem:[%s749_s3 + $0x50] sm:$0xff] %v568_v20  ;;  %v411_v21 = vpop.f32.mrb[5].mxu1 }
 0x1d5   :  { %450 = vst [vmem:[%s749_s3 + $0x40] sm:$0xff] %v411_v21  ;;  %v569_v22 = vpop.f32.mrb[6].mxu1 }
 0x1d6   :  { %453 = vst [vmem:[%s749_s3 + $0x58] sm:$0xff] %v569_v22  ;;  %v414_v23 = vpop.f32.mrb[7].mxu1 }
 0x1d7   :  { %451 = vst [vmem:[%s749_s3 + $0x48] sm:$0xff] %v414_v23 }
 0x1db   :  { %v572_v24 = vpop.f32.mrb[8].mxu1 }
 0x1dc   :  { %456 = vst [vmem:[%s749_s3 + $0x70] sm:$0xff] %v572_v24  ;;  %v427_v25 = vpop.f32.mrb[9].mxu1 }
 0x1dd   :  { %454 = vst [vmem:[%s749_s3 + $0x60] sm:$0xff] %v427_v25  ;;  %v573_v26 = vpop.f32.mrb[10].mxu1 }
 0x1de   :  { %457 = vst [vmem:[%s749_s3 + $0x78] sm:$0xff] %v573_v26  ;;  %v430_v27 = vpop.f32.mrb[11].mxu1 }
 0x1df   :  { %455 = vst [vmem:[%s749_s3 + $0x68] sm:$0xff] %v430_v27 }

</bundles_post_ra>
